<compile_context>
chip_gen: v7x
topology: tpu7x:2x2x1
jax: 0.10.0
libtpu: 0.0.40
codegen_flags: <defaults>
</compile_context>

<pallas_src>
import functools

import jax
import jax.numpy as jnp
from jax import lax
from jax.experimental import pallas as pl
from jax.experimental.pallas import tpu as pltpu


def _simsiam_partial_kernel(p1_ref, z2_ref, p2_ref, z1_ref, out_ref, *,
                            n_rows: int, tile_rows: int, eps_sq: float,
                            clamp_product: bool):
    i = pl.program_id(0)
    eps2 = jnp.float32(eps_sq)

    # Row-validity mask for the (possibly partial) last tile.  Tail rows of
    # the block hold unspecified data, so the per-row cosine is masked before
    # the reduction (jnp.where/select does not propagate NaN/Inf).
    row_ids = lax.broadcasted_iota(jnp.int32, (tile_rows, 1), 0) + i * tile_rows
    mask = row_ids < n_rows

    def branch_cos_sum(p_ref, z_ref):
        p = p_ref[...].astype(jnp.float32)
        z = z_ref[...].astype(jnp.float32)
        dot = jnp.sum(p * z, axis=1, keepdims=True)   # [TM, 1]
        pss = jnp.sum(p * p, axis=1, keepdims=True)   # [TM, 1]
        zss = jnp.sum(z * z, axis=1, keepdims=True)   # [TM, 1]
        if clamp_product:
            # torch.cosine_similarity ('simplified'): clamp ||p||^2 * ||z||^2.
            inv = lax.rsqrt(jnp.maximum(pss * zss, eps2))
        else:
            # F.normalize ('original'): clamp each norm separately.
            inv = lax.rsqrt(jnp.maximum(pss, eps2)) * lax.rsqrt(jnp.maximum(zss, eps2))
        return jnp.sum(jnp.where(mask, dot * inv, jnp.float32(0.0)))

    total = branch_cos_sum(p1_ref, z2_ref) + branch_cos_sum(p2_ref, z1_ref)
    # Lane-dense per-tile partial (unmasked vst); final reduce happens outside.
    out_ref[...] = jnp.full(out_ref.shape, total, dtype=jnp.float32)


def simsiam_loss(z1, z2, p1, p2, *, version: str = "simplified",
                 block_rows: int | None = None):
    """SimSiamLoss.forward(z1, z2, p1, p2) -> scalar f32."""
    assert z1.shape == z2.shape == p1.shape == p2.shape and p1.ndim == 2
    n, d = p1.shape
    itemsize = jnp.dtype(p1.dtype).itemsize

    # VMEM capacity (per TensorCore); conservative fallback = v7x's 64 MiB.
    try:
        vmem_cap = int(pltpu.get_tpu_info().vmem_capacity_bytes)
    except Exception:
        vmem_cap = 64 << 20

    # Auto tile sizing: 2 (double-buffer) x 4 inputs must fit ~70% of VMEM;
    # per-block bytes capped at ~8 MiB (HBM-bandwidth plateau).
    if block_rows is None:
        budget = int(vmem_cap * 0.7)
        per_block = min(budget // 8, 8 << 20)
        block_rows = max(8, per_block // (d * itemsize))
    if block_rows >= n:
        tm = n                                  # single full-extent tile
    else:
        tm = max(8, (min(block_rows, n) // 8) * 8)   # sublane-aligned tile

    num_tiles = pl.cdiv(n, tm)

    if version == "original":
        eps, clamp_product = 1e-12, False
    else:  # 'simplified'
        eps, clamp_product = 1e-8, True

    kernel = functools.partial(
        _simsiam_partial_kernel,
        n_rows=n, tile_rows=tm,
        eps_sq=float(eps) * float(eps),
        clamp_product=clamp_product,
    )

    row_spec = pl.BlockSpec((tm, d), lambda i: (i, 0))
    out_spec = pl.BlockSpec((1, 8, 128), lambda i: (i, 0, 0))

    input_buffers = 2 * 4 * tm * d * itemsize            # double-buffered inputs
    vmem_limit = min(vmem_cap, max(16 << 20, input_buffers + (4 << 20)))

    partials = pl.pallas_call(
        kernel,
        out_shape=jax.ShapeDtypeStruct((num_tiles, 8, 128), jnp.float32),
        grid=(num_tiles,),
        in_specs=[row_spec, row_spec, row_spec, row_spec],
        out_specs=out_spec,
        compiler_params=pltpu.CompilerParams(
            dimension_semantics=("parallel",),            # independent per-tile partials
            vmem_limit_bytes=int(vmem_limit),
        ),
        cost_estimate=pl.CostEstimate(
            flops=12 * n * d,                             # 2 branches x 3 products + reduces
            transcendentals=4 * n,                        # rsqrt per row per branch
            bytes_accessed=4 * n * d * itemsize + num_tiles * 8 * 128 * 4,
        ),
    )(p1, z2, p2, z1)

    # Tiny final reduce + single negate/scale: loss = -0.5/N * sum(cos).
    return jnp.sum(partials[:, 0, 0]) * jnp.float32(-0.5 / float(n))


def _reference(z1, z2, p1, p2, version="simplified"):
    """Pure-JAX mirror of the PyTorch module."""
    if version == "simplified":
        eps = 1e-8

        def cos(p, z):
            dot = jnp.sum(p * z, axis=1)
            denom = jnp.sqrt(jnp.maximum(jnp.sum(p * p, 1) * jnp.sum(z * z, 1),
                                         eps * eps))
            return dot / denom
    else:
        eps = 1e-12

        def cos(p, z):
            pn = p / jnp.maximum(jnp.linalg.norm(p, axis=1, keepdims=True), eps)
            zn = z / jnp.maximum(jnp.linalg.norm(z, axis=1, keepdims=True), eps)
            return jnp.sum(pn * zn, axis=1)

    loss1 = -jnp.mean(cos(p1, z2))
    loss2 = -jnp.mean(cos(p2, z1))
    return 0.5 * loss1 + 0.5 * loss2


if __name__ == "__main__":
    key = jax.random.PRNGKey(0)
    k1, k2, k3, k4 = jax.random.split(key, 4)

    # Small [batch, feature] projections/predictions, as the module implies.
    # N=20 with block_rows=8 exercises a 3-step grid with a masked partial tile.
    N, D = 20, 32
    z1 = jax.random.normal(k1, (N, D), dtype=jnp.float32)
    z2 = jax.random.normal(k2, (N, D), dtype=jnp.float32)
    p1 = jax.random.normal(k3, (N, D), dtype=jnp.float32)
    p2 = jax.random.normal(k4, (N, D), dtype=jnp.float32)

    # Multi-tile path with in-kernel masking of the partial last tile.
    loss = simsiam_loss(z1, z2, p1, p2, block_rows=8)
    jax.block_until_ready(loss)
    ref = _reference(z1, z2, p1, p2, version="simplified")
    assert jnp.allclose(loss, ref, atol=1e-5, rtol=1e-5), (loss, ref)

    # Auto-sized single-tile path.
    loss_auto = simsiam_loss(z1, z2, p1, p2)
    jax.block_until_ready(loss_auto)
    assert jnp.allclose(loss_auto, ref, atol=1e-5, rtol=1e-5), (loss_auto, ref)

    # 'original' (F.normalize) variant.
    loss_orig = simsiam_loss(z1, z2, p1, p2, version="original", block_rows=8)
    jax.block_until_ready(loss_orig)
    ref_orig = _reference(z1, z2, p1, p2, version="original")
    assert jnp.allclose(loss_orig, ref_orig, atol=1e-5, rtol=1e-5), (loss_orig, ref_orig)

    print("KERNEL_OK")
</pallas_src>

<mosaic_0001>
module attributes {stable_mosaic.version = 11 : i64} {
  func.func @_simsiam_partial_kernel(%arg0: i32, %arg1: memref<8x32xf32, #tpu.memory_space<vmem>>, %arg2: memref<8x32xf32, #tpu.memory_space<vmem>>, %arg3: memref<8x32xf32, #tpu.memory_space<vmem>>, %arg4: memref<8x32xf32, #tpu.memory_space<vmem>>, %arg5: memref<1x8x128xf32, #tpu.memory_space<vmem>>) attributes {dimension_semantics = [#tpu.dimension_semantics<parallel>], iteration_bounds = array<i64: 3>, scalar_prefetch = 0 : i64, scratch_operands = 0 : i64, tpu.core_type = #tpu.core_type<tc>, window_params = [{transform_indices = @transform_0, window_bounds = array<i64: 8, 32>}, {transform_indices = @transform_1, window_bounds = array<i64: 8, 32>}, {transform_indices = @transform_2, window_bounds = array<i64: 8, 32>}, {transform_indices = @transform_3, window_bounds = array<i64: 8, 32>}, {transform_indices = @transform_4, window_bounds = array<i64: 1, 8, 128>}]} {
    %0 = tpu.iota {dimensions = array<i32: 0>} : vector<8x1xi32>
    %c8_i32 = arith.constant 8 : i32
    %1 = arith.muli %arg0, %c8_i32 : i32
    %2 = vector.broadcast %1 : i32 to vector<8x1xi32>
    %3 = arith.addi %0, %2 : vector<8x1xi32>
    %c20_i32 = arith.constant 20 : i32
    %4 = vector.broadcast %c20_i32 : i32 to vector<8x1xi32>
    %5 = arith.cmpi slt, %3, %4 : vector<8x1xi32>
    %c0 = arith.constant 0 : index
    %c0_0 = arith.constant 0 : index
    %6 = vector.load %arg1[%c0, %c0_0] : memref<8x32xf32, #tpu.memory_space<vmem>>, vector<8x32xf32>
    %c0_1 = arith.constant 0 : index
    %c0_2 = arith.constant 0 : index
    %7 = vector.load %arg2[%c0_1, %c0_2] : memref<8x32xf32, #tpu.memory_space<vmem>>, vector<8x32xf32>
    %8 = arith.mulf %6, %7 : vector<8x32xf32>
    %cst = arith.constant dense<0.000000e+00> : vector<8xf32>
    %9 = vector.multi_reduction <add>, %8, %cst [1] : vector<8x32xf32> to vector<8xf32>
    %10 = vector.shape_cast %9 : vector<8xf32> to vector<8x1xf32>
    %11 = arith.mulf %6, %6 : vector<8x32xf32>
    %cst_3 = arith.constant dense<0.000000e+00> : vector<8xf32>
    %12 = vector.multi_reduction <add>, %11, %cst_3 [1] : vector<8x32xf32> to vector<8xf32>
    %13 = vector.shape_cast %12 : vector<8xf32> to vector<8x1xf32>
    %14 = arith.mulf %7, %7 : vector<8x32xf32>
    %cst_4 = arith.constant dense<0.000000e+00> : vector<8xf32>
    %15 = vector.multi_reduction <add>, %14, %cst_4 [1] : vector<8x32xf32> to vector<8xf32>
    %16 = vector.shape_cast %15 : vector<8xf32> to vector<8x1xf32>
    %17 = arith.mulf %13, %16 : vector<8x1xf32>
    %cst_5 = arith.constant 1.000000e-16 : f32
    %18 = vector.broadcast %cst_5 : f32 to vector<8x1xf32>
    %19 = arith.maximumf %17, %18 : vector<8x1xf32>
    %20 = math.rsqrt %19 : vector<8x1xf32>
    %21 = arith.mulf %10, %20 : vector<8x1xf32>
    %cst_6 = arith.constant 0.000000e+00 : f32
    %22 = vector.broadcast %cst_6 : f32 to vector<8x1xf32>
    %23 = arith.select %5, %21, %22 : vector<8x1xi1>, vector<8x1xf32>
    %24 = vector.shape_cast %23 : vector<8x1xf32> to vector<1x8x1xf32>
    %cst_7 = arith.constant dense<0.000000e+00> : vector<1xf32>
    %25 = vector.multi_reduction <add>, %24, %cst_7 [1, 2] : vector<1x8x1xf32> to vector<1xf32>
    %26 = vector.shape_cast %25 : vector<1xf32> to vector<1x1x1xf32>
    %27 = vector.extract %26[0, 0, 0] : f32 from vector<1x1x1xf32>
    %c0_8 = arith.constant 0 : index
    %c0_9 = arith.constant 0 : index
    %28 = vector.load %arg3[%c0_8, %c0_9] : memref<8x32xf32, #tpu.memory_space<vmem>>, vector<8x32xf32>
    %c0_10 = arith.constant 0 : index
    %c0_11 = arith.constant 0 : index
    %29 = vector.load %arg4[%c0_10, %c0_11] : memref<8x32xf32, #tpu.memory_space<vmem>>, vector<8x32xf32>
    %30 = arith.mulf %28, %29 : vector<8x32xf32>
    %cst_12 = arith.constant dense<0.000000e+00> : vector<8xf32>
    %31 = vector.multi_reduction <add>, %30, %cst_12 [1] : vector<8x32xf32> to vector<8xf32>
    %32 = vector.shape_cast %31 : vector<8xf32> to vector<8x1xf32>
    %33 = arith.mulf %28, %28 : vector<8x32xf32>
    %cst_13 = arith.constant dense<0.000000e+00> : vector<8xf32>
    %34 = vector.multi_reduction <add>, %33, %cst_13 [1] : vector<8x32xf32> to vector<8xf32>
    %35 = vector.shape_cast %34 : vector<8xf32> to vector<8x1xf32>
    %36 = arith.mulf %29, %29 : vector<8x32xf32>
    %cst_14 = arith.constant dense<0.000000e+00> : vector<8xf32>
    %37 = vector.multi_reduction <add>, %36, %cst_14 [1] : vector<8x32xf32> to vector<8xf32>
    %38 = vector.shape_cast %37 : vector<8xf32> to vector<8x1xf32>
    %39 = arith.mulf %35, %38 : vector<8x1xf32>
    %cst_15 = arith.constant 1.000000e-16 : f32
    %40 = vector.broadcast %cst_15 : f32 to vector<8x1xf32>
    %41 = arith.maximumf %39, %40 : vector<8x1xf32>
    %42 = math.rsqrt %41 : vector<8x1xf32>
    %43 = arith.mulf %32, %42 : vector<8x1xf32>
    %cst_16 = arith.constant 0.000000e+00 : f32
    %44 = vector.broadcast %cst_16 : f32 to vector<8x1xf32>
    %45 = arith.select %5, %43, %44 : vector<8x1xi1>, vector<8x1xf32>
    %46 = vector.shape_cast %45 : vector<8x1xf32> to vector<1x8x1xf32>
    %cst_17 = arith.constant dense<0.000000e+00> : vector<1xf32>
    %47 = vector.multi_reduction <add>, %46, %cst_17 [1, 2] : vector<1x8x1xf32> to vector<1xf32>
    %48 = vector.shape_cast %47 : vector<1xf32> to vector<1x1x1xf32>
    %49 = vector.extract %48[0, 0, 0] : f32 from vector<1x1x1xf32>
    %50 = arith.addf %27, %49 : f32
    %51 = vector.broadcast %50 : f32 to vector<1x8x128xf32>
    %c0_18 = arith.constant 0 : index
    %c0_19 = arith.constant 0 : index
    %c0_20 = arith.constant 0 : index
    %52 = vector.load %arg5[%c0_18, %c0_19, %c0_20] : memref<1x8x128xf32, #tpu.memory_space<vmem>>, vector<1x8x128xf32>
    tpu.vector_store %arg5[%c0_18, %c0_19, %c0_20], %51 {strides = array<i32>} : memref<1x8x128xf32, #tpu.memory_space<vmem>>, vector<1x8x128xf32>,
    return
  }
  func.func @transform_0(%arg0: i32) -> (i32, i32) {
    %c0_i32 = arith.constant 0 : i32
    %c0_i32_0 = arith.constant 0 : i32
    return %arg0, %c0_i32 : i32, i32
  }
  func.func @transform_1(%arg0: i32) -> (i32, i32) {
    %c0_i32 = arith.constant 0 : i32
    %c0_i32_0 = arith.constant 0 : i32
    return %arg0, %c0_i32 : i32, i32
  }
  func.func @transform_2(%arg0: i32) -> (i32, i32) {
    %c0_i32 = arith.constant 0 : i32
    %c0_i32_0 = arith.constant 0 : i32
    return %arg0, %c0_i32 : i32, i32
  }
  func.func @transform_3(%arg0: i32) -> (i32, i32) {
    %c0_i32 = arith.constant 0 : i32
    %c0_i32_0 = arith.constant 0 : i32
    return %arg0, %c0_i32 : i32, i32
  }
  func.func @transform_4(%arg0: i32) -> (i32, i32, i32) {
    %c0_i32 = arith.constant 0 : i32
    %c0_i32_0 = arith.constant 0 : i32
    %c0_i32_1 = arith.constant 0 : i32
    return %arg0, %c0_i32, %c0_i32_0 : i32, i32, i32
  }
}

</mosaic_0001>

<bundles_post_ra>
// kernel: tpu_custom_call.1
= control target key start
LH: loop header
LB: loop body
LE: loop exit
PB: predicated region body
PF: predicated region fallthrough
CT: control target
= control target key end

     0   :  { %s1128_s0 = inlined_call_operand.hbm [shape: f32[20,32], index: 0, kind: input, shape index: {}]   ;;  %s1129_s1 = inlined_call_operand.hbm [shape: f32[20,32], index: 1, kind: input, shape index: {}]   ;;  %s1130_s2 = inlined_call_operand.hbm [shape: f32[20,32], index: 2, kind: input, shape index: {}]   ;;  %s1131_s3 = inlined_call_operand.hbm [shape: f32[20,32], index: 3, kind: input, shape index: {}]   ;;  %s1132_s4 = inlined_call_operand.hbm [shape: f32[3,8,128], index: 4, kind: output, shape index: {}]  }
   0x1   :  { %1138 = sst [smem:[#allocation17_spill]] %s1129_s1 }
   0x2   :  { %9 = vsyncpa [#allocation3], 0 }
   0x3   :  { %11 = vsyncpa [#allocation3 + $0x1], 0 }
   0x4   :  { %12 = vsyncpa [#allocation6], 0 }
   0x5   :  { %14 = vsyncpa [#allocation6 + $0x1], 0 }
   0x6   :  { %15 = vsyncpa [#allocation9], 0 }
   0x7   :  { %17 = vsyncpa [#allocation9 + $0x1], 0 }
   0x8   :  { %18 = vsyncpa [#allocation4], 0 }
   0x9   :  { %20 = vsyncpa [#allocation4 + $0x1], 0  ;;  %s857_s15 = smov 0   ;;  %s859_s16 = smov 0  }
   0xa   :  { %s861_s17 = smov 0   ;;  %s863_s18 = smov 0  }
   0xb LB: > { %1139 = sst [smem:[#allocation15_spill]] %s821_s17  ;;  %s878_s19 = sadd.s32 4294967295, %s825_s18   ;;  %s825_s18 = sphi %s863_s18, %s1160_s18   ;;  %s821_s17 = sphi %s861_s17, %s1157_s17   ;;  %s817_s16 = sphi %s859_s16, %s1159_s16   ;;  %s813_s15 = sphi %s857_s15, %s1158_s15  }
   0xc   : > { %s540_s20 = sadd.s32 4294967294, %s825_s18   ;;  %s882_s21 = sadd.s32 1, %s825_s18  }
   0xd   : > { %s33_s22 = sadd.s32 1, %s821_s17  ;;  %s30_s23 = ssub.s32 %s825_s18, %s882_s21 }
   0xe   : > { %p40_p0 = scmp.ne.s32.totalorder %s821_s17, %s817_s16  ;;  %p31_p1 = scmp.eq.s32.totalorder %s30_s23, 0 }
   0xf   : > { %p41_p2 = scmp.eq.s32.totalorder %s825_s18, 0  ;;  %p46_p3 = scmp.ne.s32.totalorder %s817_s16, %s813_s15 }
  0x10   : > { %p47_p4 = scmp.eq.s32.totalorder %s878_s19, 0  ;;  %p148_p7 = scmp.eq.s32.totalorder %s878_s19, 2 }
  0x11   : > { %s894_s24 = scalar_select %p31_p1, %s821_s17, %s33_s22  }
  0x12   : > { %p42_p5 = por %p41_p2, %p40_p0  ;;  %p896_p6 = por %p47_p4, %p46_p3 }
  0x13   : > { %1140 = sst [smem:[#allocation16_spill]] %s894_s24  ;;  %p154_p8 = scmp.eq.s32.totalorder %s540_s20, 2 }
  0x14   : > { %s1141_s25 = scalar_select %p896_p6, 1, 0 }
  0x15   : > { %p593_p9 = scmp.lt.s32.totalorder %s825_s18, 3  ;;  %p902_p10 = por %p148_p7, %p40_p0 }
  0x16   : > { %p906_p11 = por %p154_p8, %p46_p3  ;;  %s911_s28 = sand.u32 1, %s821_s17  }
  0x17   : > { %s1142_s26 = scalar_select %p902_p10, 1, 0 }
  0x18   : > { %s1143_s27 = scalar_select %p906_p11, 1, 0 }
  0x19   : > { %s914_s29 = sshll.u32 %s825_s18, 7  ;;  %s917_s30 = sshll.u32 %s911_s28, 3 }
  0x1a   : > { %p919_p12 = pnand %p593_p9, %p42_p5  ;;  %s192_s6 = sand.u32 1, %s825_s18  }
  0x1b   : > { %s1145_s1 = sld [smem:[#allocation17_spill]]  ;;  %s196_s10 = scalar_lea.vmem [#allocation5], %s917_s30 }
  0x1c   : > { %s1144_s5 = scalar_select %p919_p12, 1, 0 }
  0x1d   : > { %s203_s11 = sshll.u32 %s196_s10, 4  ;;  %s934_s12 = scalar_lea.sflag [#allocation6], %s192_s6  ;;  %s931_s11 = int_to_ptr.vmem [resolvable:$true] %s203_s11 }
  0x1e   : > { %p940_p1 = pneg %p919_p12 }
  0x21   : > { %s928_s9 = scalar_lea.hbm %s1145_s1, %s914_s29  ;;  %s636_s23 = scalar_lea.hbm %s1145_s1, 384 }
  0x22   : > { %s631_s13 = scalar_lea.hbm %s928_s9, 128  ;;  %p637_p4 = scmp.lt.u32.totalorder %s928_s9, %s1145_s1 }
  0x23   : > { %p632_p0 = scmp.ne.s32.totalorder %s928_s9, %s631_s13  ;;  %p638_p5 = scmp.lt.u32.totalorder %s636_s23, %s631_s13 }
  0x24   : > { %p640_p8 = scmp.lt.u32.totalorder %s631_s13, %s928_s9 }
  0x25   : > { %p634_p2 = pnand %p940_p1, %p632_p0  ;;  %p639_p7 = por %p638_p5, %p637_p4 }
  0x27   : > { %p635_p3 = pneg %p634_p2  ;;  %p641_p9 = por %p640_p8, %p639_p7 }
  0x29   : > { %p642_p13 = pnand %p641_p9, %p635_p3 }
  0x2b   : > { %645 = shalt.err (!%p642_p13)
}
  0x2c   : > { %s646_s6 = scalar_lea.vmem %s931_s11, 128  ;;  %s827_s10 = smov [#allocation5]  }
  0x2d   : > { %p647_p0 = scmp.ne.s32.totalorder %s931_s11, %s646_s6  ;;  %s651_s20 = sshll.u32 %s827_s10, 4  ;;  %s652_s20 = int_to_ptr.vmem [resolvable:$false] %s651_s20 }
  0x2e   : > { %s653_s22 = scalar_lea.vmem %s652_s20, 256  ;;  %p654_p10 = scmp.lt.s32.totalorder %s931_s11, %s652_s20 }
  0x2f   : > { %p649_p2 = pnand %p647_p0, %p940_p1  ;;  %p655_p6 = scmp.lt.s32.totalorder %s653_s22, %s646_s6 }
  0x31   : > { %p650_p11 = pneg %p649_p2  ;;  %p656_p4 = por %p655_p6, %p654_p10 }
  0x33   : > { %p657_p5 = pnand %p656_p4, %p650_p11 }
  0x35   : > { %660 = shalt.err (!%p657_p5)
}
  0x36   : > { %582 = dma.hbm_to_vmem [thread:$0]  (!%p919_p12), %s928_s9, 128, %s931_s11, %s934_s12  }
  0x37   : > { %p244_p13 = scmp.lt.s32.totalorder %s825_s18, 4  ;;  %s969_s7 = scalar_lea.hbm %s1128_s0, %s914_s29 }
  0x38   : > { %p1147_p6 = scmp.ge.s32.totalorder %s825_s18, 1  ;;  %s178_s6 = scalar_lea.vmem [#allocation2], %s917_s30 }
  0x39   : > { %s185_s10 = sshll.u32 %s178_s6, 4  ;;  %s175_s20 = scalar_lea.sflag [#allocation3], %s911_s28  ;;  %s186_s10 = int_to_ptr.vmem [resolvable:$true] %s185_s10 }
  0x3a   : > { %p973_p10 = pnand %p1147_p6, %p244_p13  ;;  %s661_s9 = scalar_lea.hbm %s969_s7, 128 }
  0x3b   : > { %p662_p11 = scmp.ne.s32.totalorder %s969_s7, %s661_s9  ;;  %s666_s13 = scalar_lea.hbm %s1128_s0, 384 }
  0x3c   : > { %s1148_s8 = scalar_select %p973_p10, 1, 0 }
  0x3d   : > { %p664_p3 = pnand %p662_p11, %p940_p1  ;;  %p667_p8 = scmp.lt.u32.totalorder %s969_s7, %s1128_s0 }
  0x3e   : > { %p668_p9 = scmp.lt.u32.totalorder %s666_s13, %s661_s9  ;;  %p670_p2 = scmp.lt.u32.totalorder %s661_s9, %s969_s7 }
  0x3f   : > { %p665_p7 = pneg %p664_p3 }
  0x40   : > { %p669_p0 = por %p668_p9, %p667_p8 }
  0x42   : > { %p671_p4 = por %p670_p2, %p669_p0 }
  0x44   : > { %p672_p5 = pnand %p671_p4, %p665_p7 }
  0x46   : > { %675 = shalt.err (!%p672_p5)
}
  0x47   : > { %s676_s6 = scalar_lea.vmem %s186_s10, 128  ;;  %s828_s24 = smov [#allocation2]  }
  0x48   : > { %p677_p13 = scmp.ne.s32.totalorder %s186_s10, %s676_s6  ;;  %s681_s17 = sshll.u32 %s828_s24, 4  ;;  %s682_s17 = int_to_ptr.vmem [resolvable:$false] %s681_s17 }
  0x49   : > { %s683_s11 = scalar_lea.vmem %s682_s17, 256  ;;  %p684_p3 = scmp.lt.s32.totalorder %s186_s10, %s682_s17 }
  0x4a   : > { %p679_p6 = pnand %p677_p13, %p940_p1  ;;  %p685_p10 = scmp.lt.s32.totalorder %s683_s11, %s676_s6 }
  0x4c   : > { %p680_p11 = pneg %p679_p6  ;;  %p686_p12 = por %p685_p10, %p684_p3 }
  0x4e   : > { %p687_p8 = pnand %p686_p12, %p680_p11 }
  0x50   : > { %690 = shalt.err (!%p687_p8)
}
  0x51   : > { %p1149_p9 = scmp.ne.s32.totalorder %s1144_s5, 0  ;;  %s1000_s22 = scalar_lea.hbm %s1130_s2, %s914_s29 }
  0x52   : > { %s214_s17 = scalar_lea.vmem [#allocation7], %s917_s30  ;;  %s691_s13 = scalar_lea.hbm %s1000_s22, 128 }
  0x53   : > { %579 = dma.hbm_to_vmem [thread:$0]  (!%p1149_p9), %s969_s7, 128, %s186_s10, %s175_s20  }
  0x54   : > { %s221_s24 = sshll.u32 %s214_s17, 4  ;;  %p692_p12 = scmp.ne.s32.totalorder %s1000_s22, %s691_s13  ;;  %s222_s24 = int_to_ptr.vmem [resolvable:$true] %s221_s24 }
  0x55   : > { %s696_s7 = scalar_lea.hbm %s1130_s2, 384  ;;  %p697_p0 = scmp.lt.u32.totalorder %s1000_s22, %s1130_s2 }
  0x56   : > { %p694_p10 = pnand %p692_p12, %p940_p1  ;;  %p698_p2 = scmp.lt.u32.totalorder %s696_s7, %s691_s13 }
  0x57   : > { %p700_p5 = scmp.lt.u32.totalorder %s691_s13, %s1000_s22 }
  0x58   : > { %p695_p7 = pneg %p694_p10  ;;  %p699_p4 = por %p698_p2, %p697_p0 }
  0x5a   : > { %p701_p13 = por %p700_p5, %p699_p4 }
  0x5c   : > { %p702_p6 = pnand %p701_p13, %p695_p7 }
  0x5e   : > { %705 = shalt.err (!%p702_p6)
}
  0x5f   : > { %s706_s11 = scalar_lea.vmem %s222_s24, 128  ;;  %s829_s1 = smov [#allocation7]  }
  0x60   : > { %p707_p11 = scmp.ne.s32.totalorder %s222_s24, %s706_s11  ;;  %s711_s9 = sshll.u32 %s829_s1, 4  ;;  %s712_s9 = int_to_ptr.vmem [resolvable:$false] %s711_s9 }
  0x61   : > { %s713_s17 = scalar_lea.vmem %s712_s9, 256  ;;  %p714_p12 = scmp.lt.s32.totalorder %s222_s24, %s712_s9 }
  0x62   : > { %p709_p3 = pnand %p707_p11, %p940_p1  ;;  %p715_p10 = scmp.lt.s32.totalorder %s713_s17, %s706_s11 }
  0x64   : > { %p710_p8 = pneg %p709_p3  ;;  %p716_p9 = por %p715_p10, %p714_p12 }
  0x66   : > { %p717_p0 = pnand %p716_p9, %p710_p8 }
  0x68   : > { %720 = shalt.err (!%p717_p0)
}
  0x69   : > { %p1150_p2 = scmp.ne.s32.totalorder %s1144_s5, 0  ;;  %s1025_s6 = scalar_lea.hbm %s1131_s3, %s914_s29 }
  0x6a   : > { %s232_s7 = scalar_lea.vmem [#allocation8], %s917_s30  ;;  %s229_s20 = scalar_lea.sflag [#allocation9], %s911_s28 }
  0x6b   : > { %585 = dma.hbm_to_vmem [thread:$0]  (!%p1150_p2), %s1000_s22, 128, %s222_s24, %s934_s12  }
  0x6c   : > { %s239_s10 = sshll.u32 %s232_s7, 4  ;;  %s721_s11 = scalar_lea.hbm %s1025_s6, 128  ;;  %s240_s10 = int_to_ptr.vmem [resolvable:$true] %s239_s10 }
  0x6d   : > { %p722_p9 = scmp.ne.s32.totalorder %s1025_s6, %s721_s11  ;;  %s726_s22 = scalar_lea.hbm %s1131_s3, 384 }
  0x6e   : > { %p727_p5 = scmp.lt.u32.totalorder %s1025_s6, %s1131_s3  ;;  %p728_p13 = scmp.lt.u32.totalorder %s726_s22, %s721_s11 }
  0x6f   : > { %p724_p7 = pnand %p722_p9, %p940_p1  ;;  %p730_p11 = scmp.lt.u32.totalorder %s721_s11, %s1025_s6 }
  0x70   : > { %p729_p6 = por %p728_p13, %p727_p5 }
  0x71   : > { %p725_p4 = pneg %p724_p7 }
  0x72   : > { %p731_p3 = por %p730_p11, %p729_p6 }
  0x74   : > { %p732_p8 = pnand %p731_p3, %p725_p4 }
  0x76   : > { %735 = shalt.err (!%p732_p8)
}
  0x77   : > { %s736_s28 = scalar_lea.vmem %s240_s10, 128  ;;  %s830_s30 = smov [#allocation8]  }
  0x78   : > { %p737_p12 = scmp.ne.s32.totalorder %s240_s10, %s736_s28  ;;  %s741_s9 = sshll.u32 %s830_s30, 4  ;;  %s742_s9 = int_to_ptr.vmem [resolvable:$false] %s741_s9 }
  0x79   : > { %s743_s17 = scalar_lea.vmem %s742_s9, 256  ;;  %p744_p9 = scmp.lt.s32.totalorder %s240_s10, %s742_s9 }
  0x7a   : > { %p739_p10 = pnand %p737_p12, %p940_p1  ;;  %p745_p7 = scmp.lt.s32.totalorder %s743_s17, %s736_s28 }
  0x7c   : > { %p740_p0 = pneg %p739_p10  ;;  %p746_p2 = por %p745_p7, %p744_p9 }
  0x7e   : > { %p747_p5 = pnand %p746_p2, %p740_p0 }
  0x80   : > { %750 = shalt.err (!%p747_p5)
}
  0x81   : > { %p1151_p13 = scmp.ne.s32.totalorder %s1144_s5, 0  ;;  %p1152_p4 = scmp.ne.s32.totalorder %s1148_s8, 0 }
  0x82   : > { %s1049_s14 = sand.u32 (!%p1152_p4), 1, %s817_s16   ;;  %p1153_p1 = scmp.ne.s32.totalorder (!%p1152_p4), %s1141_s25, 0 }
  0x83   : > { %588 = dma.hbm_to_vmem [thread:$0]  (!%p1151_p13), %s1025_s6, 128, %s240_s10, %s229_s20  }
  0x84   : > { %248 = sbr.rel (%p1152_p4) target bundleno = 538 (0x21a), region = 36  ;;  %s1052_s13 = sshll.u32 (!%p1152_p4), %s1049_s14, 3 }
  0x85   : > { %s251_s23 = scalar_lea.sflag (!%p1152_p4), [#allocation3], %s1049_s14  ;;  %s254_s7 = scalar_lea.vmem (!%p1152_p4), [#allocation2], %s1052_s13 }
  0x8b   : > { %796 = dma.done.wait (%p1153_p1), %s251_s23, 128  }
  0x8c   : > { %798 = vsyncadd (%p1153_p1), %s251_s23, 4294967168  ;;  %s259_s5 = sand.u32 1, %s878_s19   ;;  %s263_s6 = scalar_lea.vmem [#allocation5], %s1052_s13 }
  0x8d   : > { %s260_s8 = scalar_lea.sflag [#allocation6], %s259_s5 }
  0x8e   : > { %800 = dma.done.wait (%p1153_p1), %s260_s8, 256  }
  0x8f   : > { %802 = vsyncadd (%p1153_p1), %s260_s8, 4294967040  ;;  %s272_s10 = scalar_lea.vmem [#allocation7], %s1052_s13  ;;  %s278_s20 = scalar_lea.sflag [#allocation9], %s1049_s14 }
  0x90   : > { %s281_s11 = scalar_lea.vmem [#allocation8], %s1052_s13 }
  0x91   : > { %804 = dma.done.wait (%p1153_p1), %s278_s20, 128  }
  0x92   : > { %806 = vsyncadd (%p1153_p1), %s278_s20, 4294967168  ;;  %vm330_vm0 = vcmask 261120   ;;  %v358_v0 = vld [vmem:[%s272_s10] sm:$0xff]  ;;  %v359_v2 = vld [vmem:[%s281_s11] sm:$0xff]  ;;  %v321_v24 = vlaneseq  ;;  %s557_s25 = sshll.u32 %s878_s19, 3  ;;  %vm347_vm2 = vcmask 7168  }
  0x93   : > { %v327_v1 = vld [vmem:[%s254_s7] sm:$0xff]  ;;  %v364_v3 = vmul.f32 %v358_v0, %v358_v0  ;;  %v368_v5 = vmul.f32 %v359_v2, %v359_v2  ;;  %v328_v6 = vld [vmem:[%s263_s6] sm:$0xff]  ;;  %v360_v12 = vmul.f32 %v359_v2, %v358_v0  ;;  %v324_v26 = vstv %s557_s25  ;;  %s559_s1 = sshll.u32 %s878_s19, 7  ;;  %s320_s22 = scalar_lea.vmem [#allocation10], %s1052_s13 }
  0x94   : > { %v334_v4 = vmul.f32 %v327_v1, %v327_v1  ;;  %v338_v7 = vmul.f32 %v328_v6, %v328_v6  ;;  %v329_v13 = vmul.f32 %v328_v6, %v327_v1  ;;  %v322_v25 = vshrl.u32 %v321_v24, 7  ;;  %s404_s24 = sshll.u32 %s320_s22, 4  ;;  %s1085_s17 = scalar_lea.hbm %s1132_s4, %s559_s1  ;;  %s1087_s24 = int_to_ptr.vmem [resolvable:$true] %s404_s24 }
  0x95   : > { %v365_v8 = vsel %vm330_vm0, %v364_v3, 0.0  ;;  %v369_v10 = vsel %vm330_vm0, %v368_v5, 0.0  ;;  %v361_v14 = vsel %vm330_vm0, %v360_v12, 0.0  ;;  %s391_s23 = scalar_lea.sflag [#allocation4], %s1049_s14  ;;  %s751_s7 = scalar_lea.vmem %s1087_s24, 128 }
  0x96   : > { %v335_v9 = vsel %vm330_vm0, %v334_v4, 0.0  ;;  %366 = vadd.xlane.f32.xlu1 %v365_v8  ;;  %v339_v11 = vsel %vm330_vm0, %v338_v7, 0.0  ;;  %v331_v15 = vsel %vm330_vm0, %v329_v13, 0.0  ;;  %v325_v27 = vadd.s32 %v324_v26, %v322_v25  ;;  %p752_p2 = scmp.ne.s32.totalorder %s1087_s24, %s751_s7  ;;  %p1154_p6 = scmp.ne.s32.totalorder %s1142_s26, 0 }
  0x97   : > { %336 = vadd.xlane.f32.xlu0 %v335_v9  ;;  %s831_s19 = smov [#allocation10]  }
  0x98   : > { %vm326_vm1 = vcmp.lt.s32.totalorder %v325_v27, 20  ;;  %p753_p11 = pnand %p752_p2, %p1154_p6  ;;  %s755_s13 = sshll.u32 %s831_s19, 4  ;;  %s756_s13 = int_to_ptr.vmem [resolvable:$false] %s755_s13 }
  0x99   : > { %s757_s5 = scalar_lea.vmem %s756_s13, 256  ;;  %p758_p8 = scmp.lt.s32.totalorder %s1087_s24, %s756_s13 }
  0x9a   : > { %370 = vadd.xlane.f32.xlu1 %v369_v10  ;;  %p754_p3 = pneg %p753_p11  ;;  %p759_p12 = scmp.lt.s32.totalorder %s757_s5, %s751_s7 }
  0x9b   : > { %340 = vadd.xlane.f32.xlu0 %v339_v11 }
  0x9c   : > { %p760_p10 = por %p759_p12, %p758_p8 }
  0x9e   : > { %362 = vadd.xlane.f32.xlu1 %v361_v14  ;;  %p761_p0 = pnand %p760_p10, %p754_p3 }
  0x9f   : > { %332 = vadd.xlane.f32.xlu0 %v331_v15 }
 0x123   : > { %v367_v16 = vpop.xlane.xlu1 %366 }
 0x124   : > { %v337_v17 = vpop.xlane.xlu0 %336 }
 0x127   : > { %v371_v18 = vpop.xlane.xlu1 %370 }
 0x128   : > { %v341_v19 = vpop.xlane.xlu0 %340  ;;  %v372_v20 = vmul.f32 %v371_v18, %v367_v16 }
 0x129   : > { %v342_v21 = vmul.f32 %v341_v19, %v337_v17 }
 0x12a   : > { %v373_v22 = vmax.f32 %v372_v20, 1e-16 }
 0x12b   : > { %v343_v23 = vmax.f32 %v342_v21, 1e-16  ;;  %v363_v28 = vpop.xlane.xlu1 %362 }
 0x12c   : > { %627 = vrsqrt.f32 %v373_v22  ;;  %v333_v29 = vpop.xlane.xlu0 %332 }
 0x12d   : > { %629 = vrsqrt.f32 %v343_v23 }
 0x136   : > { %v628_v30 = vpop.eup %627 }
 0x137   : > { %v630_v31 = vpop.eup %629  ;;  %v375_v32 = vmul.f32 %v628_v30, %v363_v28 }
 0x138   : > { %v345_v33 = vmul.f32 %v630_v31, %v333_v29 }
 0x139   : > { %v376_v34 = vsel %vm326_vm1, %v375_v32, 0.0 }
 0x13a   : > { %v377_v35 = vsel %vm347_vm2, %v376_v34, 0.0  ;;  %v346_v36 = vsel %vm326_vm1, %v345_v33, 0.0 }
 0x13b   : > { %378 = vadd.xlane.f32.xlu1 %v377_v35  ;;  %v348_v37 = vsel %vm347_vm2, %v346_v36, 0.0 }
 0x13c   : > { %349 = vadd.xlane.f32.xlu0 %v348_v37 }
 0x1c8   : > { %v379_v38 = vpop.xlane.xlu1 %378 }
 0x1c9   : > { %v380_v39 = vrot.slane %v379_v38, 4  ;;  %v350_v40 = vpop.xlane.xlu0 %349 }
 0x1ca   : > { %v351_v41 = vrot.slane %v350_v40, 4 }
 0x1cb   : > { %v381_v42 = vadd.f32 %v380_v39, %v379_v38 }
 0x1cc   : > { %v352_v43 = vadd.f32 %v351_v41, %v350_v40 }
 0x1cd   : > { %v382_v44 = vrot.slane %v381_v42, 2 }
 0x1ce   : > { %v353_v45 = vrot.slane %v352_v43, 2 }
 0x1cf   : > { %v383_v46 = vadd.f32 %v382_v44, %v381_v42 }
 0x1d0   : > { %v354_v47 = vadd.f32 %v353_v45, %v352_v43 }
 0x1d1   : > { %v384_v48 = vrot.slane %v383_v46, 1 }
 0x1d2   : > { %v355_v49 = vrot.slane %v354_v47, 1 }
 0x1d3   : > { %v385_v50 = vadd.f32 %v384_v48, %v383_v46 }
 0x1d4   : > { %v356_v51 = vadd.f32 %v355_v49, %v354_v47 }
 0x1d6   : > { %562 = vpush %v356_v51 }
 0x1d7   : > { %564 = vpush %v385_v50 }
 0x207   : > { %s563_s12 = spop %562 }
 0x208   : > { %s565_s29 = spop %564 }
 0x209   : > { %s387_s28 = sadd.f32 %s565_s29, %s563_s12 }
 0x20b   : > { %v388_v52 = vstv %s387_s28 }
 0x20c   : > { %389 = vst [vmem:[%s320_s22] sm:$0xff] %v388_v52 }
 0x20d   : > { %764 = shalt.err (!%p761_p0)
}
 0x20e   : > { %s765_s14 = scalar_lea.hbm %s1085_s17, 128  ;;  %s769_s10 = scalar_lea.hbm %s1132_s4, 384 }
 0x20f   : > { %p766_p9 = scmp.ne.s32.totalorder %s1085_s17, %s765_s14  ;;  %p770_p13 = scmp.lt.u32.totalorder %s1085_s17, %s1132_s4 }
 0x210   : > { %p771_p4 = scmp.lt.u32.totalorder %s769_s10, %s765_s14  ;;  %p773_p2 = scmp.lt.u32.totalorder %s765_s14, %s1085_s17 }
 0x211   : > { %p767_p7 = pnand %p766_p9, %p1154_p6 }
 0x212   : > { %p772_p1 = por %p771_p4, %p770_p13 }
 0x213   : > { %p768_p5 = pneg %p767_p7 }
 0x214   : > { %p774_p11 = por %p773_p2, %p772_p1 }
 0x216   : > { %p775_p3 = pnand %p774_p11, %p768_p5 }
 0x218   : > { %778 = shalt.err (!%p775_p3)
}
 0x219   : > { %574 = dma.vmem_to_hbm [thread:$0]  (%p1154_p6), %s1087_s24, 128, %s1085_s17, %s391_s23  }
 0x21a PF: > { %p594_p8 = scmp.ge.s32.totalorder %s825_s18, 2  ;;  %s416_s25 = sand.u32 1, %s813_s15  }
 0x21b   : > { %p1155_p12 = scmp.ne.s32.totalorder %s1143_s27, 0  ;;  %s417_s1 = scalar_lea.sflag [#allocation4], %s416_s25 }
 0x21d   : > { %p590_p10 = pnand %p594_p8, %p1155_p12 }
 0x21f   : > { %808 = dma.done.wait (!%p590_p10), %s417_s1, 128  }
 0x220   : > { %810 = vsyncadd (!%p590_p10), %s417_s1, 4294967168  ;;  %s1156_s12 = sld [smem:[#allocation15_spill]]  ;;  %s1157_s17 = sld [smem:[#allocation16_spill]] }
 0x221   : > { %p23_p0 = scmp.ge.s32.totalorder %s882_s21, 5   ;;  %s1158_s15 = smov %s817_s16 }
 0x222   : > { %s1160_s18 = smov %s882_s21 }
 0x223   :  { %25 = sbr.rel (!%p23_p0) target bundleno = 11 (0xb), region = 118 }
 0x226   : > { %s1159_s16 = smov %s1156_s12 }
 0x22a   :  { %422 = vsyncpa [#allocation3], 1 }
 0x22b   :  { %424 = vsyncpa [#allocation3 + $0x1], 1 }
 0x22c   :  { %425 = vsyncpa [#allocation6], 1 }
 0x22d   :  { %427 = vsyncpa [#allocation6 + $0x1], 1 }
 0x22e   :  { %428 = vsyncpa [#allocation9], 1 }
 0x22f   :  { %430 = vsyncpa [#allocation9 + $0x1], 1 }
 0x230   :  { %431 = vsyncpa [#allocation4], 1 }
 0x231   :  { %433 = vsyncpa [#allocation4 + $0x1], 1 }

</bundles_post_ra>
